<compile_context>
chip_gen: v7x
topology: tpu7x:2x2x1
jax: 0.10.0
libtpu: 0.0.40
codegen_flags: <defaults>
</compile_context>

<pallas_src>
import functools
import math

import jax
import jax.numpy as jnp
from jax.experimental import pallas as pl
from jax.experimental.pallas import tpu as pltpu


_VMEM_LIMIT_BYTES = 48 * 1024 * 1024    # safe on v5e/v6e (128 MiB) and v7x (64 MiB physical)
_TARGET_BLOCK_BYTES = 2 * 1024 * 1024   # ~2 MiB blocks -> near HBM roofline, low step overhead


def _sublane_multiple(dtype):
    # f32 -> 8, bf16 -> 16, int8/fp8 -> 32 rows per sublane tile.
    return max(8, 32 // jnp.dtype(dtype).itemsize)


def _pick_row_tile(n_rows, width, dtype):
    """Largest row tile (multiple of the sublane packing) within the byte budget."""
    mult = _sublane_multiple(dtype)
    rows = _TARGET_BLOCK_BYTES // (max(int(width), 1) * 4)  # budget in f32 elements
    rows = max(mult, (rows // mult) * mult)
    rows = min(rows, pl.cdiv(int(n_rows), mult) * mult)
    return int(rows)


def _pick_mid_tiles(outer, C, inner):
    """Block sizes for the (outer, C, inner) middle-axis kernel."""
    budget = _TARGET_BLOCK_BYTES // 4                      # elements (f32 math)
    C = max(int(C), 1)
    if inner <= 128:
        inner_tile = int(inner)                            # full extent, no 128 constraint
    else:
        lanes = max(128, ((budget // C) // 128) * 128)     # multiple of 128 within budget
        inner_tile = min(lanes, pl.cdiv(int(inner), 128) * 128)
    outer_tile = max(1, budget // (C * inner_tile))
    outer_tile = min(outer_tile, int(outer))
    return int(outer_tile), int(inner_tile)


def _compiler_params(n_grid_axes):
    return pltpu.CompilerParams(
        dimension_semantics=("parallel",) * n_grid_axes,
        vmem_limit_bytes=_VMEM_LIMIT_BYTES,
    )


# --------------------------------------------------------------------------- #
# kernels
# --------------------------------------------------------------------------- #
def _softmax_rows_kernel(x_ref, o_ref):
    # Naive formula (matches the PyTorch module): exp(x) / sum(exp(x), -1).
    e = jnp.exp(x_ref[...].astype(jnp.float32))
    s = jnp.sum(e, axis=-1, keepdims=True)
    o_ref[...] = (e * pl.reciprocal(s)).astype(o_ref.dtype)


def _softmax_mid_kernel(x_ref, o_ref):
    # Softmax along the middle (sublane) axis of a (outer, C, inner) block.
    e = jnp.exp(x_ref[...].astype(jnp.float32))
    s = jnp.sum(e, axis=1, keepdims=True)
    o_ref[...] = (e * pl.reciprocal(s)).astype(o_ref.dtype)


def _softmax_packed_kernel(x_ref, o_ref, *, seg):
    # Lane-dense path: each 128-lane row holds 128/seg independent softmax rows
    # of width `seg` (seg a power of two dividing 128).  The per-segment sum is
    # a recursive-doubling butterfly over lanes: partner lane is (lane XOR
    # shift), reached via cyclic rolls (wrapped values are never selected).
    e = jnp.exp(x_ref[...].astype(jnp.float32))
    lane = jax.lax.broadcasted_iota(jnp.int32, e.shape, dimension=1)
    s = e
    shift = 1
    while shift < seg:
        fwd = pltpu.roll(s, 128 - shift, axis=1)   # lane j <- s[j + shift]
        bwd = pltpu.roll(s, shift, axis=1)         # lane j <- s[j - shift]
        s = s + jnp.where((lane & shift) == 0, fwd, bwd)
        shift *= 2
    o_ref[...] = (e * pl.reciprocal(s)).astype(o_ref.dtype)


# --------------------------------------------------------------------------- #
# wrappers
# --------------------------------------------------------------------------- #
def _softmax_lastdim_2d(x2):
    """Softmax along the last dim of a 2-D array (R, C)."""
    R, C = int(x2.shape[0]), int(x2.shape[1])

    # lane-dense packed path for small power-of-two widths.
    if 0 < C < 128 and 128 % C == 0 and (R * C) % 128 == 0:
        Rp = (R * C) // 128
        xp = x2.reshape(Rp, 128)                   # contiguous reshape, no data movement
        row_tile = _pick_row_tile(Rp, 128, x2.dtype)
        out = pl.pallas_call(
            functools.partial(_softmax_packed_kernel, seg=C),
            out_shape=jax.ShapeDtypeStruct((Rp, 128), x2.dtype),
            grid_spec=pltpu.PrefetchScalarGridSpec(
                num_scalar_prefetch=0,
                grid=(pl.cdiv(Rp, row_tile),),
                in_specs=[pl.BlockSpec((row_tile, 128), lambda i: (i, 0))],
                out_specs=pl.BlockSpec((row_tile, 128), lambda i: (i, 0)),
            ),
            compiler_params=_compiler_params(1),
        )(xp)
        return out.reshape(R, C)

    # generic row path (partial last row-block is masked by Pallas).
    row_tile = _pick_row_tile(R, C, x2.dtype)
    return pl.pallas_call(
        _softmax_rows_kernel,
        out_shape=jax.ShapeDtypeStruct((R, C), x2.dtype),
        grid_spec=pltpu.PrefetchScalarGridSpec(
            num_scalar_prefetch=0,
            grid=(pl.cdiv(R, row_tile),),
            in_specs=[pl.BlockSpec((row_tile, C), lambda i: (i, 0))],
            out_specs=pl.BlockSpec((row_tile, C), lambda i: (i, 0)),
        ),
        compiler_params=_compiler_params(1),
    )(x2)


def softmax(x, dim=-1):
    """exp(x) / sum(exp(x), dim, keepdims=True) via Pallas TPU kernels."""
    ndim = x.ndim
    if ndim == 0:
        return jnp.exp(x) / jnp.exp(x)

    axis = dim % ndim
    shape = x.shape
    C = int(shape[axis])
    outer = int(math.prod(shape[:axis])) if axis > 0 else 1
    inner = int(math.prod(shape[axis + 1:])) if axis < ndim - 1 else 1

    # Softmax axis is (effectively) the last non-trivial dim -> row kernels.
    if axis == ndim - 1 or inner == 1:
        out = _softmax_lastdim_2d(x.reshape(outer, C))
        return out.reshape(shape)

    # Softmax along a middle axis: single pass, no transpose round-trips.
    x3 = x.reshape(outer, C, inner)
    outer_tile, inner_tile = _pick_mid_tiles(outer, C, inner)
    out = pl.pallas_call(
        _softmax_mid_kernel,
        out_shape=jax.ShapeDtypeStruct((outer, C, inner), x.dtype),
        grid_spec=pltpu.PrefetchScalarGridSpec(
            num_scalar_prefetch=0,
            grid=(pl.cdiv(outer, outer_tile), pl.cdiv(inner, inner_tile)),
            in_specs=[pl.BlockSpec((outer_tile, C, inner_tile),
                                   lambda i, j: (i, 0, j))],
            out_specs=pl.BlockSpec((outer_tile, C, inner_tile),
                                   lambda i, j: (i, 0, j)),
        ),
        compiler_params=_compiler_params(2),
    )(x3)
    return out.reshape(shape)


# --------------------------------------------------------------------------- #
# self-test
# --------------------------------------------------------------------------- #
if __name__ == "__main__":
    key = jax.random.PRNGKey(0)
    k1, k2, k3, k4 = jax.random.split(key, 4)

    def ref_softmax(x, axis=-1):
        e = jnp.exp(x.astype(jnp.float32))
        return e / jnp.sum(e, axis=axis, keepdims=True)

    ok = True

    # 1) small power-of-two width (C=32): lane-dense packed path.
    x1 = jax.random.normal(k1, (2, 4, 16, 32), dtype=jnp.float32)
    y1 = jax.block_until_ready(softmax(x1))
    assert y1.shape == x1.shape and y1.dtype == x1.dtype
    ok &= bool(jnp.allclose(y1, ref_softmax(x1), atol=1e-5, rtol=1e-5))

    # 2) full-lane width (C=128): generic row path.
    x2 = jax.random.normal(k2, (2, 4, 8, 128), dtype=jnp.float32)
    y2 = jax.block_until_ready(softmax(x2))
    ok &= bool(jnp.allclose(y2, ref_softmax(x2), atol=1e-5, rtol=1e-5))

    # 3) awkward sizes (C=100, 15 rows): generic path, masked partial block.
    x3 = jax.random.normal(k3, (3, 5, 100), dtype=jnp.float32)
    y3 = jax.block_until_ready(softmax(x3))
    ok &= bool(jnp.allclose(y3, ref_softmax(x3), atol=1e-5, rtol=1e-5))

    # 4) non-last dim with wide inner (inner=512 > 128): middle-axis kernel.
    y4 = jax.block_until_ready(softmax(x1, dim=1))
    ok &= bool(jnp.allclose(y4, ref_softmax(x1, axis=1), atol=1e-5, rtol=1e-5))

    # 5) non-last dim with narrow inner (inner=32 < 128): middle-axis kernel.
    y5 = jax.block_until_ready(softmax(x1, dim=2))
    ok &= bool(jnp.allclose(y5, ref_softmax(x1, axis=2), atol=1e-5, rtol=1e-5))

    # 6) non-last dim, dim=0: middle-axis kernel (outer=1).
    y6 = jax.block_until_ready(softmax(x3, dim=0))
    ok &= bool(jnp.allclose(y6, ref_softmax(x3, axis=0), atol=1e-5, rtol=1e-5))

    # 7) bf16 I/O (halved HBM traffic), f32 internal math.
    x7 = jax.random.normal(k4, (2, 4, 16, 32), dtype=jnp.bfloat16)
    y7 = jax.block_until_ready(softmax(x7))
    assert y7.dtype == jnp.bfloat16
    ref7 = ref_softmax(x7).astype(jnp.bfloat16)
    ok &= bool(jnp.allclose(y7.astype(jnp.float32), ref7.astype(jnp.float32),
                            atol=2e-2, rtol=2e-2))

    assert ok
    print("KERNEL_OK")
</pallas_src>

<mosaic_0001>
module attributes {stable_mosaic.version = 11 : i64} {
  func.func @_softmax_packed_kernel(%arg0: i32, %arg1: memref<32x128xf32, #tpu.memory_space<vmem>>, %arg2: memref<32x128xf32, #tpu.memory_space<vmem>>) attributes {dimension_semantics = [#tpu.dimension_semantics<parallel>], iteration_bounds = array<i64: 1>, scalar_prefetch = 0 : i64, scratch_operands = 0 : i64, tpu.core_type = #tpu.core_type<tc>, window_params = [{transform_indices = @transform_0, window_bounds = array<i64: 32, 128>}, {transform_indices = @transform_1, window_bounds = array<i64: 32, 128>}]} {
    %c0 = arith.constant 0 : index
    %c0_0 = arith.constant 0 : index
    %0 = vector.load %arg1[%c0, %c0_0] : memref<32x128xf32, #tpu.memory_space<vmem>>, vector<32x128xf32>
    %1 = math.exp %0 : vector<32x128xf32>
    %2 = tpu.iota {dimensions = array<i32: 1>} : vector<32x128xi32>
    %c127_i32 = arith.constant 127 : i32
    %3 = tpu.dynamic_rotate %1 by %c127_i32 dim 1 : vector<32x128xf32>, i32 -> vector<32x128xf32>
    %c1_i32 = arith.constant 1 : i32
    %4 = tpu.dynamic_rotate %1 by %c1_i32 dim 1 : vector<32x128xf32>, i32 -> vector<32x128xf32>
    %c1_i32_1 = arith.constant 1 : i32
    %5 = vector.broadcast %c1_i32_1 : i32 to vector<32x128xi32>
    %6 = arith.andi %2, %5 : vector<32x128xi32>
    %c0_i32 = arith.constant 0 : i32
    %7 = vector.broadcast %c0_i32 : i32 to vector<32x128xi32>
    %8 = arith.cmpi eq, %6, %7 : vector<32x128xi32>
    %9 = arith.select %8, %3, %4 : vector<32x128xi1>, vector<32x128xf32>
    %10 = arith.addf %1, %9 : vector<32x128xf32>
    %c126_i32 = arith.constant 126 : i32
    %11 = tpu.dynamic_rotate %10 by %c126_i32 dim 1 : vector<32x128xf32>, i32 -> vector<32x128xf32>
    %c2_i32 = arith.constant 2 : i32
    %12 = tpu.dynamic_rotate %10 by %c2_i32 dim 1 : vector<32x128xf32>, i32 -> vector<32x128xf32>
    %c2_i32_2 = arith.constant 2 : i32
    %13 = vector.broadcast %c2_i32_2 : i32 to vector<32x128xi32>
    %14 = arith.andi %2, %13 : vector<32x128xi32>
    %c0_i32_3 = arith.constant 0 : i32
    %15 = vector.broadcast %c0_i32_3 : i32 to vector<32x128xi32>
    %16 = arith.cmpi eq, %14, %15 : vector<32x128xi32>
    %17 = arith.select %16, %11, %12 : vector<32x128xi1>, vector<32x128xf32>
    %18 = arith.addf %10, %17 : vector<32x128xf32>
    %c124_i32 = arith.constant 124 : i32
    %19 = tpu.dynamic_rotate %18 by %c124_i32 dim 1 : vector<32x128xf32>, i32 -> vector<32x128xf32>
    %c4_i32 = arith.constant 4 : i32
    %20 = tpu.dynamic_rotate %18 by %c4_i32 dim 1 : vector<32x128xf32>, i32 -> vector<32x128xf32>
    %c4_i32_4 = arith.constant 4 : i32
    %21 = vector.broadcast %c4_i32_4 : i32 to vector<32x128xi32>
    %22 = arith.andi %2, %21 : vector<32x128xi32>
    %c0_i32_5 = arith.constant 0 : i32
    %23 = vector.broadcast %c0_i32_5 : i32 to vector<32x128xi32>
    %24 = arith.cmpi eq, %22, %23 : vector<32x128xi32>
    %25 = arith.select %24, %19, %20 : vector<32x128xi1>, vector<32x128xf32>
    %26 = arith.addf %18, %25 : vector<32x128xf32>
    %c120_i32 = arith.constant 120 : i32
    %27 = tpu.dynamic_rotate %26 by %c120_i32 dim 1 : vector<32x128xf32>, i32 -> vector<32x128xf32>
    %c8_i32 = arith.constant 8 : i32
    %28 = tpu.dynamic_rotate %26 by %c8_i32 dim 1 : vector<32x128xf32>, i32 -> vector<32x128xf32>
    %c8_i32_6 = arith.constant 8 : i32
    %29 = vector.broadcast %c8_i32_6 : i32 to vector<32x128xi32>
    %30 = arith.andi %2, %29 : vector<32x128xi32>
    %c0_i32_7 = arith.constant 0 : i32
    %31 = vector.broadcast %c0_i32_7 : i32 to vector<32x128xi32>
    %32 = arith.cmpi eq, %30, %31 : vector<32x128xi32>
    %33 = arith.select %32, %27, %28 : vector<32x128xi1>, vector<32x128xf32>
    %34 = arith.addf %26, %33 : vector<32x128xf32>
    %c112_i32 = arith.constant 112 : i32
    %35 = tpu.dynamic_rotate %34 by %c112_i32 dim 1 : vector<32x128xf32>, i32 -> vector<32x128xf32>
    %c16_i32 = arith.constant 16 : i32
    %36 = tpu.dynamic_rotate %34 by %c16_i32 dim 1 : vector<32x128xf32>, i32 -> vector<32x128xf32>
    %c16_i32_8 = arith.constant 16 : i32
    %37 = vector.broadcast %c16_i32_8 : i32 to vector<32x128xi32>
    %38 = arith.andi %2, %37 : vector<32x128xi32>
    %c0_i32_9 = arith.constant 0 : i32
    %39 = vector.broadcast %c0_i32_9 : i32 to vector<32x128xi32>
    %40 = arith.cmpi eq, %38, %39 : vector<32x128xi32>
    %41 = arith.select %40, %35, %36 : vector<32x128xi1>, vector<32x128xf32>
    %42 = arith.addf %34, %41 : vector<32x128xf32>
    %43 = tpu.reciprocal %42 : vector<32x128xf32> -> vector<32x128xf32>
    %44 = arith.mulf %1, %43 : vector<32x128xf32>
    %c0_10 = arith.constant 0 : index
    %c0_11 = arith.constant 0 : index
    %45 = vector.load %arg2[%c0_10, %c0_11] : memref<32x128xf32, #tpu.memory_space<vmem>>, vector<32x128xf32>
    tpu.vector_store %arg2[%c0_10, %c0_11], %44 {strides = array<i32>} : memref<32x128xf32, #tpu.memory_space<vmem>>, vector<32x128xf32>,
    return
  }
  func.func @transform_0(%arg0: i32) -> (i32, i32) {
    %c0_i32 = arith.constant 0 : i32
    %c0_i32_0 = arith.constant 0 : i32
    return %arg0, %c0_i32 : i32, i32
  }
  func.func @transform_1(%arg0: i32) -> (i32, i32) {
    %c0_i32 = arith.constant 0 : i32
    %c0_i32_0 = arith.constant 0 : i32
    return %arg0, %c0_i32 : i32, i32
  }
}

</mosaic_0001>

<bundles_post_ra>
// kernel: tpu_custom_call.1
= control target key start
LH: loop header
LB: loop body
LE: loop exit
PB: predicated region body
PF: predicated region fallthrough
CT: control target
= control target key end

     0   :  { %6 = vsyncpa [#allocation3], 0  ;;  %s361_s0 = inlined_call_operand.hbm [shape: f32[32,128], index: 0, kind: input, shape index: {}]   ;;  %s362_s1 = inlined_call_operand.hbm [shape: f32[32,128], index: 1, kind: output, shape index: {}]  }
   0x1   :  { %7 = vsyncpa [#allocation4], 0  ;;  %s273_s6 = smov [#allocation2]   ;;  %s225_s10 = scalar_lea.hbm %s361_s0, 512 }
   0x2   :  { %s13_s7 = sshll.u32 %s273_s6, 4  ;;  %p226_p0 = scmp.ne.s32.totalorder %s361_s0, %s225_s10  ;;  %s14_s7 = int_to_ptr.vmem [resolvable:$true] %s13_s7 }
   0x3   :  { %p229_p1 = scmp.lt.u32.totalorder %s225_s10, %s361_s0 }
   0x5   :  { %p231_p2 = pnand %p229_p1, %p226_p0 }
   0x7   :  { %234 = shalt.err (!%p231_p2)
}
   0x8   :  { %s235_s15 = scalar_lea.vmem %s14_s7, 512  ;;  %p240_p4 = scmp.lt.s32.totalorder %s14_s7, %s14_s7 }
   0x9   :  { %p236_p3 = scmp.ne.s32.totalorder %s14_s7, %s235_s15  ;;  %p241_p5 = scmp.lt.s32.totalorder %s235_s15, %s235_s15 }
   0xb   :  { %p242_p6 = por %p241_p5, %p240_p4 }
   0xd   :  { %p243_p7 = pnand %p242_p6, %p236_p3 }
   0xf   :  { %246 = shalt.err (!%p243_p7)
}
  0x10   :  { %s274_s16 = smov 128   ;;  %s275_s17 = smov 8  }
  0x11   :  { %19 = dma.hbm_to_vmem [thread:$0]  %s361_s0, 512, %s14_s7, [#allocation3], %s274_s16, %s274_s16, %s275_s17  }
  0x12   :  { %269 = dma.done.wait [#allocation3], 512  }
  0x13   :  { %270 = vsyncadd [#allocation3], 4294966784  ;;  %v25_v0 = vld [vmem:[#allocation2 + $0x10] sm:$0xff]  ;;  %v23_v1 = vld [vmem:[#allocation2] sm:$0xff]  ;;  %s276_s20 = smov 127   ;;  %s277_s0 = smov 1   ;;  %v35_v12 = vlaneseq }
  0x14   :  { %v26_v2 = vld [vmem:[#allocation2 + $0x18] sm:$0xff]  ;;  %v31_v3 = vmul.f32 1.442695, %v25_v0  ;;  %v27_v4 = vmul.f32 1.442695, %v23_v1  ;;  %v24_v6 = vld [vmem:[#allocation2 + $0x8] sm:$0xff] }
  0x15   :  { %v33_v5 = vmul.f32 1.442695, %v26_v2  ;;  %v29_v7 = vmul.f32 1.442695, %v24_v6  ;;  %v327_v13 = vand.u32 127, %v35_v12  ;;  %s278_s21 = smov 126  }
  0x16   :  { %209 = vpow2.f32 %v31_v3  ;;  %s279_s22 = smov 2   ;;  %s280_s23 = smov 124  }
  0x17   :  { %211 = vpow2.f32 %v27_v4  ;;  %v53_v16 = vand.u32 1, %v327_v13  ;;  %v79_v33 = vand.u32 2, %v327_v13  ;;  %s281_s24 = smov 4   ;;  %v105_v50 = vand.u32 4, %v327_v13  ;;  %s282_s25 = smov 120  }
  0x18   :  { %213 = vpow2.f32 %v33_v5  ;;  %v131_v3 = vand.u32 8, %v327_v13  ;;  %s283_s26 = smov 112   ;;  %s284_s27 = smov 16  }
  0x19   :  { %215 = vpow2.f32 %v29_v7  ;;  %vm54_vm0 = vcmp.eq.s32.totalorder %v53_v16, 0  ;;  %vm80_vm1 = vcmp.eq.s32.totalorder %v79_v33, 0  ;;  %vm106_vm2 = vcmp.eq.s32.totalorder %v105_v50, 0  ;;  %s285_s28 = smov [#allocation5]  }
  0x1a   :  { %vm132_vm3 = vcmp.eq.s32.totalorder %v131_v3, 0  ;;  %s184_s29 = sshll.u32 %s285_s28, 4  ;;  %s185_s29 = int_to_ptr.vmem [resolvable:$true] %s184_s29 }
  0x1b   :  { %s247_s30 = scalar_lea.vmem %s185_s29, 512  ;;  %p252_p9 = scmp.lt.s32.totalorder %s185_s29, %s185_s29 }
  0x1c   :  { %p248_p8 = scmp.ne.s32.totalorder %s185_s29, %s247_s30  ;;  %p253_p10 = scmp.lt.s32.totalorder %s247_s30, %s247_s30 }
  0x1e   :  { %p254_p11 = por %p253_p10, %p252_p9 }
  0x20   :  { %v311_v8 = vpop.eup %209  ;;  %p255_p12 = pnand %p254_p11, %p248_p8 }
  0x21   :  { %v313_v9 = vpop.eup %211  ;;  %41 = vrot.lane.b32.xlu1 %v311_v8, %s276_s20 }
  0x22   :  { %v316_v10 = vpop.eup %213  ;;  %37 = vrot.lane.b32.xlu0 %v313_v9, %s276_s20 }
  0x23   :  { %v319_v11 = vpop.eup %215 }
  0x25   :  { %43 = vrot.lane.b32.xlu1 %v316_v10, %s276_s20 }
  0x26   :  { %39 = vrot.lane.b32.xlu0 %v319_v11, %s276_s20 }
  0x29   :  { %47 = vrot.lane.b32.xlu1 %v319_v11, %s277_s0 }
  0x2a   :  { %45 = vrot.lane.b32.xlu0 %v313_v9, %s277_s0 }
  0x2d   :  { %51 = vrot.lane.b32.xlu1 %v316_v10, %s277_s0 }
  0x2e   :  { %49 = vrot.lane.b32.xlu0 %v311_v8, %s277_s0 }
  0x93   :  { %v42_v14 = vpop.permute.xlu1 %41 }
  0x94   :  { %v38_v15 = vpop.permute.xlu0 %37 }
  0x97   :  { %v44_v17 = vpop.permute.xlu1 %43 }
  0x98   :  { %v40_v18 = vpop.permute.xlu0 %39 }
  0x9b   :  { %v48_v19 = vpop.permute.xlu1 %47 }
  0x9c   :  { %v56_v20 = vsel %vm54_vm0, %v40_v18, %v48_v19  ;;  %v46_v21 = vpop.permute.xlu0 %45 }
  0x9d   :  { %v60_v22 = vadd.f32 %v319_v11, %v56_v20  ;;  %v55_v23 = vsel %vm54_vm0, %v38_v15, %v46_v21 }
  0x9e   :  { %v59_v24 = vadd.f32 %v313_v9, %v55_v23 }
  0x9f   :  { %v52_v25 = vpop.permute.xlu1 %51  ;;  %65 = vrot.lane.b32.xlu1 %v60_v22, %s278_s21 }
  0xa0   :  { %v58_v26 = vsel %vm54_vm0, %v44_v17, %v52_v25  ;;  %63 = vrot.lane.b32.xlu0 %v59_v24, %s278_s21  ;;  %v50_v27 = vpop.permute.xlu0 %49  ;;  %v157_v25 = vand.u32 16, %v327_v13 }
  0xa1   :  { %v62_v28 = vadd.f32 %v316_v10, %v58_v26  ;;  %v57_v29 = vsel %vm54_vm0, %v42_v14, %v50_v27 }
  0xa2   :  { %v61_v30 = vadd.f32 %v311_v8, %v57_v29  ;;  %vm158_vm4 = vcmp.eq.s32.totalorder %v157_v25, 0 }
  0xa3   :  { %69 = vrot.lane.b32.xlu1 %v62_v28, %s278_s21 }
  0xa4   :  { %67 = vrot.lane.b32.xlu0 %v61_v30, %s278_s21 }
  0xa7   :  { %73 = vrot.lane.b32.xlu1 %v60_v22, %s279_s22 }
  0xa8   :  { %71 = vrot.lane.b32.xlu0 %v59_v24, %s279_s22 }
  0xab   :  { %77 = vrot.lane.b32.xlu1 %v62_v28, %s279_s22 }
  0xac   :  { %75 = vrot.lane.b32.xlu0 %v61_v30, %s279_s22 }
 0x111   :  { %v66_v31 = vpop.permute.xlu1 %65 }
 0x112   :  { %v64_v32 = vpop.permute.xlu0 %63 }
 0x115   :  { %v70_v34 = vpop.permute.xlu1 %69 }
 0x116   :  { %v68_v35 = vpop.permute.xlu0 %67 }
 0x119   :  { %v74_v36 = vpop.permute.xlu1 %73 }
 0x11a   :  { %v82_v37 = vsel %vm80_vm1, %v66_v31, %v74_v36  ;;  %v72_v38 = vpop.permute.xlu0 %71 }
 0x11b   :  { %v86_v39 = vadd.f32 %v82_v37, %v60_v22  ;;  %v81_v40 = vsel %vm80_vm1, %v64_v32, %v72_v38 }
 0x11c   :  { %v85_v41 = vadd.f32 %v81_v40, %v59_v24 }
 0x11d   :  { %91 = vrot.lane.b32.xlu1 %v86_v39, %s280_s23  ;;  %v78_v42 = vpop.permute.xlu1 %77 }
 0x11e   :  { %v84_v43 = vsel %vm80_vm1, %v70_v34, %v78_v42  ;;  %89 = vrot.lane.b32.xlu0 %v85_v41, %s280_s23  ;;  %v76_v44 = vpop.permute.xlu0 %75 }
 0x11f   :  { %v88_v45 = vadd.f32 %v84_v43, %v62_v28  ;;  %v83_v46 = vsel %vm80_vm1, %v68_v35, %v76_v44 }
 0x120   :  { %v87_v47 = vadd.f32 %v83_v46, %v61_v30 }
 0x121   :  { %95 = vrot.lane.b32.xlu1 %v88_v45, %s280_s23 }
 0x122   :  { %93 = vrot.lane.b32.xlu0 %v87_v47, %s280_s23 }
 0x125   :  { %99 = vrot.lane.b32.xlu1 %v86_v39, %s281_s24 }
 0x126   :  { %97 = vrot.lane.b32.xlu0 %v85_v41, %s281_s24 }
 0x129   :  { %103 = vrot.lane.b32.xlu1 %v88_v45, %s281_s24 }
 0x12a   :  { %101 = vrot.lane.b32.xlu0 %v87_v47, %s281_s24 }
 0x18f   :  { %v92_v48 = vpop.permute.xlu1 %91 }
 0x190   :  { %v90_v49 = vpop.permute.xlu0 %89 }
 0x193   :  { %v96_v51 = vpop.permute.xlu1 %95 }
 0x194   :  { %v94_v52 = vpop.permute.xlu0 %93 }
 0x197   :  { %v100_v53 = vpop.permute.xlu1 %99 }
 0x198   :  { %v108_v54 = vsel %vm106_vm2, %v92_v48, %v100_v53  ;;  %v98_v55 = vpop.permute.xlu0 %97 }
 0x199   :  { %v112_v56 = vadd.f32 %v108_v54, %v86_v39  ;;  %v107_v57 = vsel %vm106_vm2, %v90_v49, %v98_v55 }
 0x19a   :  { %v111_v58 = vadd.f32 %v107_v57, %v85_v41 }
 0x19b   :  { %117 = vrot.lane.b32.xlu1 %v112_v56, %s282_s25  ;;  %v104_v59 = vpop.permute.xlu1 %103 }
 0x19c   :  { %v110_v60 = vsel %vm106_vm2, %v96_v51, %v104_v59  ;;  %115 = vrot.lane.b32.xlu0 %v111_v58, %s282_s25  ;;  %v102_v61 = vpop.permute.xlu0 %101 }
 0x19d   :  { %v114_v62 = vadd.f32 %v110_v60, %v88_v45  ;;  %v109_v63 = vsel %vm106_vm2, %v94_v52, %v102_v61 }
 0x19e   :  { %v113_v0 = vadd.f32 %v109_v63, %v87_v47 }
 0x19f   :  { %121 = vrot.lane.b32.xlu1 %v114_v62, %s282_s25 }
 0x1a0   :  { %119 = vrot.lane.b32.xlu0 %v113_v0, %s282_s25 }
 0x1a3   :  { %125 = vrot.lane.b32.xlu1 %v112_v56, %s275_s17 }
 0x1a4   :  { %123 = vrot.lane.b32.xlu0 %v111_v58, %s275_s17 }
 0x1a7   :  { %129 = vrot.lane.b32.xlu1 %v114_v62, %s275_s17 }
 0x1a8   :  { %127 = vrot.lane.b32.xlu0 %v113_v0, %s275_s17 }
 0x20d   :  { %v118_v1 = vpop.permute.xlu1 %117 }
 0x20e   :  { %v116_v2 = vpop.permute.xlu0 %115 }
 0x211   :  { %v122_v4 = vpop.permute.xlu1 %121 }
 0x212   :  { %v120_v5 = vpop.permute.xlu0 %119 }
 0x215   :  { %v126_v6 = vpop.permute.xlu1 %125 }
 0x216   :  { %v134_v7 = vsel %vm132_vm3, %v118_v1, %v126_v6  ;;  %v124_v12 = vpop.permute.xlu0 %123 }
 0x217   :  { %v138_v14 = vadd.f32 %v134_v7, %v112_v56  ;;  %v133_v15 = vsel %vm132_vm3, %v116_v2, %v124_v12 }
 0x218   :  { %v137_v16 = vadd.f32 %v133_v15, %v111_v58 }
 0x219   :  { %143 = vrot.lane.b32.xlu1 %v138_v14, %s283_s26  ;;  %v130_v17 = vpop.permute.xlu1 %129 }
 0x21a   :  { %v136_v18 = vsel %vm132_vm3, %v122_v4, %v130_v17  ;;  %141 = vrot.lane.b32.xlu0 %v137_v16, %s283_s26  ;;  %v128_v19 = vpop.permute.xlu0 %127 }
 0x21b   :  { %v140_v20 = vadd.f32 %v136_v18, %v114_v62  ;;  %v135_v21 = vsel %vm132_vm3, %v120_v5, %v128_v19 }
 0x21c   :  { %v139_v22 = vadd.f32 %v135_v21, %v113_v0 }
 0x21d   :  { %147 = vrot.lane.b32.xlu1 %v140_v20, %s283_s26 }
 0x21e   :  { %145 = vrot.lane.b32.xlu0 %v139_v22, %s283_s26 }
 0x221   :  { %151 = vrot.lane.b32.xlu1 %v138_v14, %s284_s27 }
 0x222   :  { %149 = vrot.lane.b32.xlu0 %v137_v16, %s284_s27 }
 0x225   :  { %155 = vrot.lane.b32.xlu1 %v140_v20, %s284_s27 }
 0x226   :  { %153 = vrot.lane.b32.xlu0 %v139_v22, %s284_s27 }
 0x28b   :  { %v144_v23 = vpop.permute.xlu1 %143 }
 0x28c   :  { %v142_v24 = vpop.permute.xlu0 %141 }
 0x28f   :  { %v148_v26 = vpop.permute.xlu1 %147 }
 0x290   :  { %v146_v27 = vpop.permute.xlu0 %145 }
 0x293   :  { %v152_v28 = vpop.permute.xlu1 %151 }
 0x294   :  { %v160_v29 = vsel %vm158_vm4, %v144_v23, %v152_v28  ;;  %v150_v30 = vpop.permute.xlu0 %149 }
 0x295   :  { %v164_v31 = vadd.f32 %v160_v29, %v138_v14  ;;  %v159_v32 = vsel %vm158_vm4, %v142_v24, %v150_v30 }
 0x296   :  { %v163_v33 = vadd.f32 %v159_v32, %v137_v16 }
 0x297   :  { %217 = vrcp.f32 %v164_v31  ;;  %v156_v34 = vpop.permute.xlu1 %155 }
 0x298   :  { %219 = vrcp.f32 %v163_v33  ;;  %v162_v35 = vsel %vm158_vm4, %v148_v26, %v156_v34  ;;  %v154_v36 = vpop.permute.xlu0 %153 }
 0x299   :  { %v166_v37 = vadd.f32 %v162_v35, %v140_v20  ;;  %v161_v38 = vsel %vm158_vm4, %v146_v27, %v154_v36 }
 0x29a   :  { %v165_v39 = vadd.f32 %v161_v38, %v139_v22 }
 0x29b   :  { %221 = vrcp.f32 %v166_v37 }
 0x29c   :  { %223 = vrcp.f32 %v165_v39 }
 0x2a1   :  { %v218_v13 = vpop.eup %217 }
 0x2a2   :  { %v220_v40 = vpop.eup %219  ;;  %v172_v41 = vmul.f32 %v218_v13, %v319_v11 }
 0x2a3   :  { %v171_v42 = vmul.f32 %v220_v40, %v313_v9 }
 0x2a4   :  { %176 = vst [vmem:[#allocation5 + $0x8] sm:$0xff] %v172_v41 }
 0x2a5   :  { %v222_v43 = vpop.eup %221  ;;  %175 = vst [vmem:[#allocation5] sm:$0xff] %v171_v42 }
 0x2a6   :  { %v224_v44 = vpop.eup %223  ;;  %v174_v45 = vmul.f32 %v222_v43, %v316_v10 }
 0x2a7   :  { %v173_v46 = vmul.f32 %v224_v44, %v311_v8 }
 0x2a8   :  { %178 = vst [vmem:[#allocation5 + $0x18] sm:$0xff] %v174_v45 }
 0x2a9   :  { %177 = vst [vmem:[#allocation5 + $0x10] sm:$0xff] %v173_v46 }
 0x2aa   :  { %258 = shalt.err (!%p255_p12)
}
 0x2ab   :  { %s259_s4 = scalar_lea.hbm %s362_s1, 512 }
 0x2ac   :  { %p260_p13 = scmp.ne.s32.totalorder %s362_s1, %s259_s4  ;;  %p263_p0 = scmp.lt.u32.totalorder %s259_s4, %s362_s1 }
 0x2ae   :  { %p265_p1 = pnand %p263_p0, %p260_p13 }
 0x2b0   :  { %268 = shalt.err (!%p265_p1)
}
 0x2b1   :  { %190 = dma.vmem_to_hbm [thread:$0]  %s185_s29, 512, %s362_s1, [#allocation4], %s274_s16, %s274_s16, %s275_s17  }
 0x2b2   :  { %271 = dma.done.wait [#allocation4], 512  }
 0x2b3   :  { %272 = vsyncadd [#allocation4], 4294966784 }
 0x2b4   :  { %194 = vsyncpa [#allocation3], 1 }
 0x2b5   :  { %195 = vsyncpa [#allocation4], 1 }

</bundles_post_ra>
